<compile_context>
chip_gen: v6e
topology: v6e:2x2x1
jax: 0.10.0
libtpu: 0.0.40
codegen_flags: <defaults>
</compile_context>

<pallas_src>
import functools

import jax
import jax.numpy as jnp
from jax.experimental import pallas as pl
from jax.experimental.pallas import tpu as pltpu

_EPS = 1e-6
_LANE = 128


def _mae_log_kernel(pred_ref, gt_ref, err_ref, cnt_ref, *, n, block_rows, inner):
    # Zero the per-split resident accumulators at the start of each reduction sweep.
    @pl.when(pl.program_id(1) == 0)
    def _():
        err_ref[...] = jnp.zeros_like(err_ref)
        cnt_ref[...] = jnp.zeros_like(cnt_ref)

    # Global element index of every lane in this block (tail / duplicate-block mask).
    block_idx = pl.program_id(0) * inner + pl.program_id(1)
    row0 = block_idx * block_rows
    row_ids = jax.lax.broadcasted_iota(jnp.int32, (block_rows, _LANE), 0)
    lane_ids = jax.lax.broadcasted_iota(jnp.int32, (block_rows, _LANE), 1)
    idx = (row0 + row_ids) * _LANE + lane_ids
    in_bounds = idx < n

    pred = jnp.maximum(pred_ref[...].astype(jnp.float32), 0.0)  # torch.clamp(min=0)
    gt = gt_ref[...].astype(jnp.float32)
    mask = jnp.logical_and(in_bounds, gt > 0.0)                 # (gt > 0).detach()

    # Fused single-log form of |log(pred+eps) - log(gt+eps)| (one EUP op).
    abs_err = jnp.abs(jnp.log((pred + _EPS) / (gt + _EPS)))
    # jnp.where (not multiply-by-mask) so NaN/Inf in masked lanes never propagate.
    contrib = jnp.where(mask, abs_err, 0.0)
    counts = mask.astype(jnp.float32)

    # Fold the (block_rows, 128) tile into the fixed (8, 128) accumulators.
    err_ref[...] += jnp.sum(contrib.reshape(block_rows // 8, 8, _LANE), axis=0)
    cnt_ref[...] += jnp.sum(counts.reshape(block_rows // 8, 8, _LANE), axis=0)


def mae_log_loss(prediction, gt, *, block_rows=2048, nsplit=2):
    pred_flat = prediction.reshape(-1)
    gt_flat = gt.reshape(-1)
    n = int(pred_flat.shape[0])

    # Lane-dense slab; rows rounded up to a multiple of 8 (sublane constraint).
    rows = -(-n // _LANE)
    rows = -(-rows // 8) * 8
    padded = rows * _LANE
    if padded != n:
        # Rare fallback: numel not a multiple of 8*128 -> minimal pad to the slab.
        # (gt pads with 0 so the padding is also excluded by the gt > 0 mask.)
        pred_flat = jnp.pad(pred_flat, (0, padded - n))
        gt_flat = jnp.pad(gt_flat, (0, padded - n))
    pred2 = pred_flat.reshape(rows, _LANE)
    gt2 = gt_flat.reshape(rows, _LANE)

    br = max(8, (min(block_rows, rows) // 8) * 8)   # multiple of 8, <= rows
    nblocks = -(-rows // br)
    nsp = max(1, min(nsplit, nblocks))              # parallel splits (v7x megacore)
    inner = -(-nblocks // nsp)

    def in_index_map(c, i):
        # Clamp so every DMA stays in-bounds; clamped duplicate blocks are fully
        # masked in-kernel by the idx < n test, so they contribute nothing.
        return (jnp.minimum(c * inner + i, nblocks - 1), 0)

    kernel = functools.partial(_mae_log_kernel, n=n, block_rows=br, inner=inner)

    err_acc, cnt_acc = pl.pallas_call(
        kernel,
        out_shape=(
            jax.ShapeDtypeStruct((nsp * 8, _LANE), jnp.float32),
            jax.ShapeDtypeStruct((nsp * 8, _LANE), jnp.float32),
        ),
        grid_spec=pltpu.PrefetchScalarGridSpec(
            num_scalar_prefetch=0,
            grid=(nsp, inner),
            in_specs=[
                pl.BlockSpec((br, _LANE), in_index_map),
                pl.BlockSpec((br, _LANE), in_index_map),
            ],
            out_specs=(
                pl.BlockSpec((8, _LANE), lambda c, i: (c, 0)),
                pl.BlockSpec((8, _LANE), lambda c, i: (c, 0)),
            ),
        ),
        compiler_params=pltpu.CompilerParams(
            dimension_semantics=("parallel", "arbitrary")),
    )(pred2, gt2)

    # Tiny final reduction + divide (glue). 0/0 -> NaN matches torch.mean of empty.
    return jnp.sum(err_acc) / jnp.sum(cnt_acc)


def _reference(prediction, gt):
    pred = jnp.maximum(prediction.astype(jnp.float32), 0.0)
    gt = gt.astype(jnp.float32)
    abs_err = jnp.abs(jnp.log(pred + _EPS) - jnp.log(gt + _EPS))
    mask = gt > 0.0
    abs_err = jnp.where(mask, abs_err, 0.0)
    return jnp.sum(abs_err) / jnp.sum(mask.astype(jnp.float32))


if __name__ == "__main__":
    key = jax.random.PRNGKey(0)
    k1, k2 = jax.random.split(key)
    # NCHW inputs, small shapes; include negatives so clamp and the mask matter.
    prediction = jax.random.normal(k1, (2, 4, 16, 16), dtype=jnp.float32) + 0.5
    gt = jax.random.normal(k2, (2, 4, 16, 16), dtype=jnp.float32) + 0.3

    loss = jax.block_until_ready(mae_log_loss(prediction, gt))
    ref = jax.block_until_ready(_reference(prediction, gt))

    assert jnp.isfinite(loss), f"non-finite loss: {loss}"
    assert jnp.allclose(loss, ref, rtol=1e-5, atol=1e-5), f"mismatch: {loss} vs {ref}"
    print("KERNEL_OK")
</pallas_src>

<mosaic_0001>
module attributes {stable_mosaic.version = 11 : i64} {
  func.func @_mae_log_kernel(%arg0: i32, %arg1: i32, %arg2: memref<16x128xf32, #tpu.memory_space<vmem>>, %arg3: memref<16x128xf32, #tpu.memory_space<vmem>>, %arg4: memref<8x128xf32, #tpu.memory_space<vmem>>, %arg5: memref<8x128xf32, #tpu.memory_space<vmem>>) attributes {dimension_semantics = [#tpu.dimension_semantics<parallel>, #tpu.dimension_semantics<arbitrary>], iteration_bounds = array<i64: 1, 1>, scalar_prefetch = 0 : i64, scratch_operands = 0 : i64, tpu.core_type = #tpu.core_type<tc>, window_params = [{transform_indices = @transform_0, window_bounds = array<i64: 16, 128>}, {transform_indices = @transform_1, window_bounds = array<i64: 16, 128>}, {transform_indices = @transform_2, window_bounds = array<i64: 8, 128>}, {transform_indices = @transform_3, window_bounds = array<i64: 8, 128>}]} {
    %c0_i32 = arith.constant 0 : i32
    %0 = arith.cmpi eq, %arg1, %c0_i32 : i32
    %1 = arith.extui %0 : i1 to i32
    %c0_i32_0 = arith.constant 0 : i32
    %2 = arith.cmpi ne, %1, %c0_i32_0 : i32
    scf.if %2 {
      %cst_18 = arith.constant 0.000000e+00 : f32
      %43 = vector.broadcast %cst_18 : f32 to vector<8x128xf32>
      %c0_19 = arith.constant 0 : index
      %c0_20 = arith.constant 0 : index
      %44 = vector.load %arg4[%c0_19, %c0_20] : memref<8x128xf32, #tpu.memory_space<vmem>>, vector<8x128xf32>
      tpu.vector_store %arg4[%c0_19, %c0_20], %43 {strides = array<i32>} : memref<8x128xf32, #tpu.memory_space<vmem>>, vector<8x128xf32>,
      %cst_21 = arith.constant 0.000000e+00 : f32
      %45 = vector.broadcast %cst_21 : f32 to vector<8x128xf32>
      %c0_22 = arith.constant 0 : index
      %c0_23 = arith.constant 0 : index
      %46 = vector.load %arg5[%c0_22, %c0_23] : memref<8x128xf32, #tpu.memory_space<vmem>>, vector<8x128xf32>
      tpu.vector_store %arg5[%c0_22, %c0_23], %45 {strides = array<i32>} : memref<8x128xf32, #tpu.memory_space<vmem>>, vector<8x128xf32>,
    } else {
    }
    %c1_i32 = arith.constant 1 : i32
    %3 = arith.muli %arg0, %c1_i32 : i32
    %4 = arith.addi %3, %arg1 : i32
    %c16_i32 = arith.constant 16 : i32
    %5 = arith.muli %4, %c16_i32 : i32
    %6 = tpu.iota {dimensions = array<i32: 0>} : vector<16x128xi32>
    %7 = tpu.iota {dimensions = array<i32: 1>} : vector<16x128xi32>
    %8 = vector.broadcast %5 : i32 to vector<16x128xi32>
    %9 = arith.addi %8, %6 : vector<16x128xi32>
    %c128_i32 = arith.constant 128 : i32
    %10 = vector.broadcast %c128_i32 : i32 to vector<16x128xi32>
    %11 = arith.muli %9, %10 : vector<16x128xi32>
    %12 = arith.addi %11, %7 : vector<16x128xi32>
    %c2048_i32 = arith.constant 2048 : i32
    %13 = vector.broadcast %c2048_i32 : i32 to vector<16x128xi32>
    %14 = arith.cmpi slt, %12, %13 : vector<16x128xi32>
    %c0 = arith.constant 0 : index
    %c0_1 = arith.constant 0 : index
    %15 = vector.load %arg2[%c0, %c0_1] : memref<16x128xf32, #tpu.memory_space<vmem>>, vector<16x128xf32>
    %cst = arith.constant 0.000000e+00 : f32
    %16 = vector.broadcast %cst : f32 to vector<16x128xf32>
    %17 = arith.maximumf %15, %16 : vector<16x128xf32>
    %c0_2 = arith.constant 0 : index
    %c0_3 = arith.constant 0 : index
    %18 = vector.load %arg3[%c0_2, %c0_3] : memref<16x128xf32, #tpu.memory_space<vmem>>, vector<16x128xf32>
    %cst_4 = arith.constant 0.000000e+00 : f32
    %19 = vector.broadcast %cst_4 : f32 to vector<16x128xf32>
    %20 = arith.cmpf ogt, %18, %19 : vector<16x128xf32>
    %21 = arith.andi %14, %20 : vector<16x128xi1>
    %cst_5 = arith.constant 9.99999997E-7 : f32
    %22 = vector.broadcast %cst_5 : f32 to vector<16x128xf32>
    %23 = arith.addf %17, %22 : vector<16x128xf32>
    %cst_6 = arith.constant 9.99999997E-7 : f32
    %24 = vector.broadcast %cst_6 : f32 to vector<16x128xf32>
    %25 = arith.addf %18, %24 : vector<16x128xf32>
    %26 = arith.divf %23, %25 : vector<16x128xf32>
    %27 = math.log %26 : vector<16x128xf32>
    %28 = math.absf %27 : vector<16x128xf32>
    %cst_7 = arith.constant 0.000000e+00 : f32
    %29 = vector.broadcast %cst_7 : f32 to vector<16x128xf32>
    %30 = arith.select %21, %28, %29 : vector<16x128xi1>, vector<16x128xf32>
    %31 = arith.extui %21 : vector<16x128xi1> to vector<16x128xi32>
    %32 = arith.sitofp %31 : vector<16x128xi32> to vector<16x128xf32>
    %c0_8 = arith.constant 0 : index
    %c0_9 = arith.constant 0 : index
    %33 = vector.load %arg4[%c0_8, %c0_9] : memref<8x128xf32, #tpu.memory_space<vmem>>, vector<8x128xf32>
    %34 = vector.shape_cast %30 : vector<16x128xf32> to vector<2x8x128xf32>
    %cst_10 = arith.constant dense<0.000000e+00> : vector<8x128xf32>
    %35 = vector.multi_reduction <add>, %34, %cst_10 [0] : vector<2x8x128xf32> to vector<8x128xf32>
    %36 = arith.addf %33, %35 : vector<8x128xf32>
    %c0_11 = arith.constant 0 : index
    %c0_12 = arith.constant 0 : index
    %37 = vector.load %arg4[%c0_11, %c0_12] : memref<8x128xf32, #tpu.memory_space<vmem>>, vector<8x128xf32>
    tpu.vector_store %arg4[%c0_11, %c0_12], %36 {strides = array<i32>} : memref<8x128xf32, #tpu.memory_space<vmem>>, vector<8x128xf32>,
    %c0_13 = arith.constant 0 : index
    %c0_14 = arith.constant 0 : index
    %38 = vector.load %arg5[%c0_13, %c0_14] : memref<8x128xf32, #tpu.memory_space<vmem>>, vector<8x128xf32>
    %39 = vector.shape_cast %32 : vector<16x128xf32> to vector<2x8x128xf32>
    %cst_15 = arith.constant dense<0.000000e+00> : vector<8x128xf32>
    %40 = vector.multi_reduction <add>, %39, %cst_15 [0] : vector<2x8x128xf32> to vector<8x128xf32>
    %41 = arith.addf %38, %40 : vector<8x128xf32>
    %c0_16 = arith.constant 0 : index
    %c0_17 = arith.constant 0 : index
    %42 = vector.load %arg5[%c0_16, %c0_17] : memref<8x128xf32, #tpu.memory_space<vmem>>, vector<8x128xf32>
    tpu.vector_store %arg5[%c0_16, %c0_17], %41 {strides = array<i32>} : memref<8x128xf32, #tpu.memory_space<vmem>>, vector<8x128xf32>,
    return
  }
  func.func @transform_0(%arg0: i32, %arg1: i32) -> (i32, i32) {
    %c1_i32 = arith.constant 1 : i32
    %0 = arith.muli %arg0, %c1_i32 : i32
    %1 = arith.addi %0, %arg1 : i32
    %c0_i32 = arith.constant 0 : i32
    %2 = arith.minsi %1, %c0_i32 : i32
    %c0_i32_0 = arith.constant 0 : i32
    %c0_i32_1 = arith.constant 0 : i32
    return %2, %c0_i32_0 : i32, i32
  }
  func.func @transform_1(%arg0: i32, %arg1: i32) -> (i32, i32) {
    %c1_i32 = arith.constant 1 : i32
    %0 = arith.muli %arg0, %c1_i32 : i32
    %1 = arith.addi %0, %arg1 : i32
    %c0_i32 = arith.constant 0 : i32
    %2 = arith.minsi %1, %c0_i32 : i32
    %c0_i32_0 = arith.constant 0 : i32
    %c0_i32_1 = arith.constant 0 : i32
    return %2, %c0_i32_0 : i32, i32
  }
  func.func @transform_2(%arg0: i32, %arg1: i32) -> (i32, i32) {
    %c0_i32 = arith.constant 0 : i32
    %c0_i32_0 = arith.constant 0 : i32
    return %arg0, %c0_i32 : i32, i32
  }
  func.func @transform_3(%arg0: i32, %arg1: i32) -> (i32, i32) {
    %c0_i32 = arith.constant 0 : i32
    %c0_i32_0 = arith.constant 0 : i32
    return %arg0, %c0_i32 : i32, i32
  }
}

</mosaic_0001>

<bundles_post_ra>
// kernel: tpu_custom_call.1
= control target key start
LH: loop header
LB: loop body
LE: loop exit
PB: predicated region body
PF: predicated region fallthrough
CT: control target
= control target key end

     0   :  { %9 = vsyncpa [#allocation3], 0  ;;  %s317_s0 = inlined_call_operand.hbm [shape: f32[16,128], index: 0, kind: input, shape index: {}]   ;;  %s318_s1 = inlined_call_operand.hbm [shape: f32[16,128], index: 1, kind: input, shape index: {}]   ;;  %s319_s2 = inlined_call_operand.hbm [shape: f32[8,128], index: 2, kind: output, shape index: {0}]   ;;  %s320_s3 = inlined_call_operand.hbm [shape: f32[8,128], index: 3, kind: output, shape index: {1}]  }
   0x1   :  { %10 = vsyncpa [#allocation6], 0 }
   0x2   :  { %11 = vsyncpa [#allocation4], 0 }
   0x3   :  { %12 = vsyncpa [#allocation9], 0  ;;  %s262_s12 = smov [#allocation2]  }
   0x4   :  { %s24_s13 = sshll.u32 %s262_s12, 4  ;;  %s25_s13 = int_to_ptr.vmem [resolvable:$true] %s24_s13 }
   0x5   :  { %s182_s14 = scalar_lea.vmem %s25_s13, 256  ;;  %p187_p1 = scmp.lt.s32.totalorder %s25_s13, %s25_s13 }
   0x6   :  { %p183_p0 = scmp.ne.s32.totalorder %s25_s13, %s182_s14  ;;  %p188_p2 = scmp.lt.s32.totalorder %s182_s14, %s182_s14 }
   0x8   :  { %p189_p3 = por %p188_p2, %p187_p1 }
   0xa   :  { %p190_p4 = pnand %p189_p3, %p183_p0 }
   0xc   :  { %193 = shalt.err (!%p190_p4)
}
   0xd   :  { %s263_s15 = smov 128   ;;  %s264_s16 = smov 8  }
   0xe   :  { %30 = dma.hbm_to_vmem [thread:$0]  %s317_s0, 256, %s25_s13, [#allocation3], %s263_s15, %s263_s15, %s264_s16  }
   0xf   :  { %s265_s19 = smov [#allocation5]  }
  0x10   :  { %s42_s20 = sshll.u32 %s265_s19, 4  ;;  %s43_s20 = int_to_ptr.vmem [resolvable:$true] %s42_s20 }
  0x11   :  { %s202_s21 = scalar_lea.vmem %s43_s20, 256  ;;  %p207_p6 = scmp.lt.s32.totalorder %s43_s20, %s43_s20 }
  0x12   :  { %p203_p5 = scmp.ne.s32.totalorder %s43_s20, %s202_s21  ;;  %p208_p7 = scmp.lt.s32.totalorder %s202_s21, %s202_s21 }
  0x14   :  { %p209_p8 = por %p208_p7, %p207_p6 }
  0x16   :  { %p210_p9 = pnand %p209_p8, %p203_p5 }
  0x18   :  { %213 = shalt.err (!%p210_p9)
}
  0x19   :  { %48 = dma.hbm_to_vmem [thread:$0]  %s318_s1, 256, %s43_s20, [#allocation6], %s263_s15, %s263_s15, %s264_s16  }
  0x1a   :  { %254 = dma.done.wait [#allocation3], 256  }
  0x1b   :  { %255 = vsyncadd [#allocation3], 4294967040 }
  0x1c   :  { %256 = dma.done.wait [#allocation6], 256  }
  0x1d   :  { %257 = vsyncadd [#allocation6], 4294967040  ;;  %v71_v0 = vlaneseq  ;;  %v89_v7 = vld [vmem:[#allocation5] sm:$0xff]  ;;  %v90_v9 = vld [vmem:[#allocation5 + $0x8] sm:$0xff]  ;;  %v266_v14 = vmov 0.0   ;;  %s267_s0 = smov [#allocation8]  }
  0x1e   :  { %vm91_vm1 = vcmp.gt.f32.partialorder %v89_v7, 0.0  ;;  %vm92_vm2 = vcmp.gt.f32.partialorder %v90_v9, 0.0  ;;  %v97_v10 = vadd.f32 1e-06, %v89_v7  ;;  %v98_v11 = vadd.f32 1e-06, %v90_v9 }
  0x1f   :  { %v72_v1 = vshrl.u32 %v71_v0, 7  ;;  %v75_v2 = vand.u32 127, %v71_v0  ;;  %s139_s1 = sshll.u32 %s267_s0, 4  ;;  %v85_v18 = vld [vmem:[#allocation2] sm:$0xff]  ;;  %v86_v19 = vld [vmem:[#allocation2 + $0x8] sm:$0xff]  ;;  %s140_s1 = int_to_ptr.vmem [resolvable:$true] %s139_s1 }
  0x20   :  { %166 = vrcp.f32 %v97_v10  ;;  %v87_v20 = vmax.f32 %v85_v18, 0.0  ;;  %v88_v21 = vmax.f32 %v86_v19, 0.0  ;;  %s214_s24 = scalar_lea.vmem %s140_s1, 128  ;;  %p219_p11 = scmp.lt.s32.totalorder %s140_s1, %s140_s1 }
  0x21   :  { %v73_v3 = vadd.s32 8, %v72_v1  ;;  %v79_v4 = vmul.u32 128, %v72_v1  ;;  %168 = vrcp.f32 %v98_v11  ;;  %p215_p10 = scmp.ne.s32.totalorder %s140_s1, %s214_s24  ;;  %p220_p12 = scmp.lt.s32.totalorder %s214_s24, %s214_s24 }
  0x23   :  { %v80_v5 = vmul.u32 128, %v73_v3  ;;  %v81_v6 = vadd.s32 %v79_v4, %v75_v2  ;;  %p221_p13 = por %p220_p12, %p219_p11 }
  0x25   :  { %v82_v8 = vadd.s32 %v80_v5, %v75_v2  ;;  %vm83_vm0 = vcmp.lt.s32.totalorder %v81_v6, 2048  ;;  %p222_p0 = pnand %p221_p13, %p215_p10 }
  0x26   :  { %vm295_vm4 = vmand %vm83_vm0, %vm91_vm1 }
  0x27   :  { %vm84_vm3 = vcmp.lt.s32.totalorder %v82_v8, 2048  ;;  %v157_v15 = vsel %vm295_vm4, 1.0, %v266_v14 }
  0x28   :  { %vm299_vm5 = vmand %vm84_vm3, %vm92_vm2 }
  0x29   :  { %v158_v16 = vsel %vm299_vm5, 1.0, %v266_v14 }
  0x2a   :  { %v120_v17 = vadd.f32 %v158_v16, %v157_v15 }
  0x2c   :  { %122 = vst [vmem:[#allocation8] sm:$0xff] %v120_v17 }
  0x2d   :  { %225 = shalt.err (!%p222_p0)
}
  0x2e   :  { %142 = dma.vmem_to_hbm [thread:$0]  %s140_s1, 128, %s320_s3, [#allocation9]   ;;  %v95_v22 = vadd.f32 1e-06, %v87_v20  ;;  %v96_v23 = vadd.f32 1e-06, %v88_v21  ;;  %v167_v24 = vpop.eup %166 }
  0x2f   :  { %v169_v25 = vpop.eup %168  ;;  %s268_s3 = smov [#allocation7]  }
  0x30   :  { %v100_v26 = vmul.f32 %v167_v24, %v95_v22  ;;  %v102_v27 = vmul.f32 %v169_v25, %v96_v23  ;;  %s129_s27 = sshll.u32 %s268_s3, 4  ;;  %s130_s27 = int_to_ptr.vmem [resolvable:$true] %s129_s27 }
  0x31   :  { %s234_s28 = scalar_lea.vmem %s130_s27, 128  ;;  %p239_p2 = scmp.lt.s32.totalorder %s130_s27, %s130_s27 }
  0x32   :  { %170 = vlog2.f32 %v100_v26  ;;  %p235_p1 = scmp.ne.s32.totalorder %s130_s27, %s234_s28  ;;  %p240_p3 = scmp.lt.s32.totalorder %s234_s28, %s234_s28 }
  0x33   :  { %172 = vlog2.f32 %v102_v27 }
  0x34   :  { %p241_p4 = por %p240_p3, %p239_p2 }
  0x36   :  { %p242_p5 = pnand %p241_p4, %p235_p1 }
  0x3f   :  { %v171_v28 = vpop.eup %170 }
  0x40   :  { %v173_v29 = vpop.eup %172  ;;  %v104_v30 = vmul.f32 0.6931472, %v171_v28 }
  0x41   :  { %v106_v31 = vmul.f32 0.6931472, %v173_v29 }
  0x42   :  { %v107_v32 = vand.u32 2147483647, %v104_v30 }
  0x43   :  { %v108_v33 = vand.u32 2147483647, %v106_v31 }
  0x44   :  { %v109_v34 = vsel %vm295_vm4, %v107_v32, 0.0 }
  0x45   :  { %v110_v35 = vsel %vm299_vm5, %v108_v33, 0.0 }
  0x46   :  { %v116_v36 = vadd.f32 %v110_v35, %v109_v34 }
  0x48   :  { %118 = vst [vmem:[#allocation7] sm:$0xff] %v116_v36 }
  0x49   :  { %245 = shalt.err (!%p242_p5)
}
  0x4a   :  { %132 = dma.vmem_to_hbm [thread:$0]  %s130_s27, 128, %s319_s2, [#allocation4]  }
  0x4b   :  { %258 = dma.done.wait [#allocation4], 128  }
  0x4c   :  { %259 = vsyncadd [#allocation4], 4294967168 }
  0x4d   :  { %260 = dma.done.wait [#allocation9], 128  }
  0x4e   :  { %261 = vsyncadd [#allocation9], 4294967168 }
  0x4f   :  { %149 = vsyncpa [#allocation3], 1 }
  0x50   :  { %150 = vsyncpa [#allocation6], 1 }
  0x51   :  { %151 = vsyncpa [#allocation4], 1 }
  0x52   :  { %152 = vsyncpa [#allocation9], 1 }

</bundles_post_ra>
